<compile_context>
chip_gen: v6e
topology: v6e:2x2x1
jax: 0.10.0
libtpu: 0.0.40
codegen_flags: <defaults>
</compile_context>

<pallas_src>
import functools
import inspect

import jax
import jax.numpy as jnp
from jax.experimental import pallas as pl
from jax.experimental.pallas import tpu as pltpu

LANE = 128           # every feature dim is zero-padded to a multiple of this
SUBLANE = 8          # f32 sublane granularity for the batch tile
OUT_PAD = LANE       # padded width of the final Linear(H, 1) output
MAX_BATCH_TILE = 2048


def _round_up(n, m):
    return ((n + m - 1) // m) * m


def _pick_batch_tile(batch):
    """Largest sublane-aligned batch tile <= MAX_BATCH_TILE; once the batch is
    big enough to split, prefer >= 2 grid steps (v7x has 2 TensorCores)."""
    if batch <= 2 * SUBLANE:
        return _round_up(batch, SUBLANE)
    half = _round_up(pl.cdiv(batch, 2), SUBLANE)
    return min(MAX_BATCH_TILE, half)


def _blockspec_supports_pipeline_mode():
    try:
        return (hasattr(pl, "Buffered")
                and "pipeline_mode" in inspect.signature(pl.BlockSpec).parameters)
    except (TypeError, ValueError):
        return False


_SUPPORTS_PIPELINE_MODE = _blockspec_supports_pipeline_mode()


def _replicated_spec(shape, single_buffer):
    """Grid-invariant operand (weights/bias). Single-buffer it when supported
    to trim constant-weight VMEM (mostly matters on v7x's 64 MiB/TC)."""
    if single_buffer and _SUPPORTS_PIPELINE_MODE:
        return pl.BlockSpec(shape, lambda i: (0, 0), pipeline_mode=pl.Buffered(1))
    return pl.BlockSpec(shape, lambda i: (0, 0))


# ----------------------------- Pallas kernel ------------------------------- #

def _make_fused_mlp_kernel(n_hidden, has_output):
    """Builds the fused kernel body (Python loop unrolls at trace time)."""

    def kernel(*refs):
        x_ref = refs[0]
        o_ref = refs[-1]
        h = x_ref[...]
        idx = 1
        for _ in range(n_hidden):
            w_ref, b_ref = refs[idx], refs[idx + 1]
            idx += 2
            # y = relu(x @ W' + b')   (eval-mode BN folded into W', b')
            h = jnp.dot(h, w_ref[...], preferred_element_type=jnp.float32)
            h = jnp.maximum(h + b_ref[...], 0.0)
            # Dropout in eval mode is identity.
        if has_output:
            w_ref, b_ref = refs[idx], refs[idx + 1]
            # Final Linear(H, 1) padded to 128 output lanes: MXU matmul keeps
            # the result lane-dense (unmasked vst); lane 0 holds the logit.
            h = jnp.dot(h, w_ref[...], preferred_element_type=jnp.float32)
            h = h + b_ref[...]
        o_ref[...] = h.astype(o_ref.dtype)

    return kernel


# ------------------------------ JAX wrapper -------------------------------- #

@functools.partial(
    jax.jit,
    static_argnames=("n_hidden", "has_output", "last_hidden_dim", "din_pad",
                     "single_buffer_weights"))
def _mlp_forward(x, flat_params, *, n_hidden, has_output, last_hidden_dim,
                 din_pad, single_buffer_weights):
    """x: (B, Din) f32; flat_params: (w1, b1, ..., [w_out, b_out]) already
    BN-folded, transposed to (in, out) and zero-padded to 128-lane widths."""
    B, Din = x.shape

    # Lane-dense input: zero-pad the feature dim to the padded width.
    if din_pad != Din:
        x = jnp.pad(x, ((0, 0), (0, din_pad - Din)))

    # Batch tiling: zero-pad the batch to a multiple of the tile; padded rows
    # are computed (cheaply) and discarded by the slice at the end.
    tile_b = _pick_batch_tile(B)
    b_pad = _round_up(B, tile_b)
    if b_pad != B:
        x = jnp.pad(x, ((0, b_pad - B), (0, 0)))
    grid = (b_pad // tile_b,)

    out_cols = flat_params[-1].shape[1]  # padded last-layer width (128*k)

    in_specs = [pl.BlockSpec((tile_b, din_pad), lambda i: (i, 0))]
    for p in flat_params:
        in_specs.append(_replicated_spec(p.shape, single_buffer_weights))

    out_specs = pl.BlockSpec((tile_b, out_cols), lambda i: (i, 0))
    out_shape = jax.ShapeDtypeStruct((b_pad, out_cols), jnp.float32)

    # Advisory cost estimate (padded flops / bytes).
    flops = 0
    for j in range(n_hidden):
        w = flat_params[2 * j]
        flops += 2 * b_pad * w.shape[0] * w.shape[1] + 2 * b_pad * w.shape[1]
    if has_output:
        w = flat_params[-2]
        flops += 2 * b_pad * w.shape[0] * w.shape[1]
    param_bytes = 4 * sum(int(p.size) for p in flat_params)
    bytes_accessed = 4 * (b_pad * din_pad + b_pad * out_cols) + param_bytes

    # VMEM budget with headroom: double-buffered x/out blocks, weight buffers,
    # and live intermediate activations (one per layer, 128-wide).
    widest = max([din_pad, out_cols] + [int(p.shape[-1]) for p in flat_params])
    per_step_bytes = (4 * tile_b * din_pad * 2
                      + 4 * tile_b * out_cols * 2
                      + 2 * param_bytes
                      + 4 * tile_b * widest * (n_hidden + 2))
    vmem_limit = int(min(64 << 20, max(32 << 20, 2 * per_step_bytes)))

    out = pl.pallas_call(
        _make_fused_mlp_kernel(n_hidden, has_output),
        out_shape=out_shape,
        grid=grid,
        in_specs=in_specs,
        out_specs=out_specs,
        compiler_params=pltpu.CompilerParams(
            dimension_semantics=("parallel",),
            vmem_limit_bytes=vmem_limit),
        cost_estimate=pl.CostEstimate(flops=int(flops), transcendentals=0,
                                      bytes_accessed=int(bytes_accessed)),
    )(x, *flat_params)

    cols = 1 if has_output else last_hidden_dim
    return out[:B, :cols]


def mlp_apply(x, flat_params, meta):
    kwargs = dict(n_hidden=meta["n_hidden"], has_output=meta["has_output"],
                  last_hidden_dim=meta["last_hidden_dim"],
                  din_pad=meta["din_pad"])
    params = tuple(flat_params)
    try:
        return _mlp_forward(x, params, single_buffer_weights=True, **kwargs)
    except Exception:
        # Fallback if pl.Buffered(1) single-buffering is rejected by this
        # JAX/Mosaic build: retry with default double-buffered weight specs.
        return _mlp_forward(x, params, single_buffer_weights=False, **kwargs)


# ------------------------------ Model setup -------------------------------- #

def init_mlp_params(key, input_dim, embed_dims, output_layer=True):
    """Raw parameters mirroring PyTorch defaults and layout.
    Linear: weight (out,in) ~ U(+-1/sqrt(in)), bias (out,) ~ U(+-1/sqrt(in)).
    BatchNorm1d: gamma=1, beta=0, running_mean=0, running_var=1, eps=1e-5."""
    layers = []
    d_in = input_dim
    for d_out in embed_dims:
        key, kw, kb = jax.random.split(key, 3)
        bound = 1.0 / (d_in ** 0.5)
        w = jax.random.uniform(kw, (d_out, d_in), jnp.float32, -bound, bound)
        b = jax.random.uniform(kb, (d_out,), jnp.float32, -bound, bound)
        bn = dict(gamma=jnp.ones((d_out,), jnp.float32),
                  beta=jnp.zeros((d_out,), jnp.float32),
                  mean=jnp.zeros((d_out,), jnp.float32),
                  var=jnp.ones((d_out,), jnp.float32),
                  eps=1e-5)
        layers.append(dict(kind="hidden", w=w, b=b, bn=bn))
        d_in = d_out
    if output_layer:
        key, kw, kb = jax.random.split(key, 3)
        bound = 1.0 / (d_in ** 0.5)
        w = jax.random.uniform(kw, (1, d_in), jnp.float32, -bound, bound)
        b = jax.random.uniform(kb, (1,), jnp.float32, -bound, bound)
        layers.append(dict(kind="output", w=w, b=b))
    return layers


def prepare_fused_params(layers, input_dim):
    """Fold eval-mode BN into each Linear, transpose weights to (in, out), and
    zero-pad ALL feature dims (including Din and the final 1-wide output) to
    multiples of 128 lanes.  Padded lanes carry zero weight and zero bias, so
    relu(0) = 0 propagates and contributes nothing; padded output lanes are
    sliced off in the wrapper."""
    flat = []
    meta = dict(n_hidden=0, has_output=False, last_hidden_dim=None,
                din_pad=_round_up(input_dim, LANE))
    d_in_pad = meta["din_pad"]
    for layer in layers:
        if layer["kind"] == "hidden":
            d_out, d_in = layer["w"].shape
            w = layer["w"].T                    # (d_in, d_out): kernel does x @ W
            b = layer["b"]
            bn = layer["bn"]
            scale = bn["gamma"] / jnp.sqrt(bn["var"] + bn["eps"])
            shift = bn["beta"] - bn["mean"] * scale
            w = w * scale[None, :]              # fold BN into weights
            b = b * scale + shift
            d_out_pad = _round_up(d_out, LANE)
            w = jnp.pad(w, ((0, d_in_pad - d_in), (0, d_out_pad - d_out)))
            b = jnp.pad(b, (0, d_out_pad - d_out))
            flat += [w, b[None, :]]
            meta["n_hidden"] += 1
            meta["last_hidden_dim"] = d_out
            d_in_pad = d_out_pad
        else:
            d_out, d_in = layer["w"].shape      # (1, d_in)
            w = layer["w"].T                    # (d_in, 1)
            w = jnp.pad(w, ((0, d_in_pad - d_in), (0, OUT_PAD - d_out)))
            b = jnp.pad(layer["b"], (0, OUT_PAD - d_out))
            flat += [w, b[None, :]]             # (d_in_pad, 128), (1, 128)
            meta["has_output"] = True
    return flat, meta


# ------------------------------ Reference ---------------------------------- #

def mlp_reference(layers, x):
    """Pure-JAX eval-mode reference with PyTorch semantics (unfolded BN)."""
    h = x
    for layer in layers:
        if layer["kind"] == "hidden":
            h = h @ layer["w"].T + layer["b"]
            bn = layer["bn"]
            h = (h - bn["mean"]) / jnp.sqrt(bn["var"] + bn["eps"]) \
                * bn["gamma"] + bn["beta"]
            h = jnp.maximum(h, 0.0)
            # Dropout: eval mode -> identity.
        else:
            h = h @ layer["w"].T + layer["b"]
    return h


# ---------------------------------- Main ----------------------------------- #

if __name__ == "__main__":
    key = jax.random.PRNGKey(0)
    input_dim = 16
    embed_dims = (32, 16)
    dropout = 0.5  # eval mode -> identity

    k_params, k_x1, k_x2, k_x3, k_p2 = jax.random.split(key, 5)
    layers = init_mlp_params(k_params, input_dim, embed_dims, output_layer=True)
    flat, meta = prepare_fused_params(layers, input_dim)

    # Small demo batch (single grid step).
    batch = 8
    x = jax.random.normal(k_x1, (batch, input_dim), jnp.float32)
    out = jax.block_until_ready(mlp_apply(x, flat, meta))
    ref = mlp_reference(layers, x)
    assert out.shape == (batch, 1), out.shape
    assert jnp.allclose(out, ref, atol=1e-5, rtol=1e-4)

    # Larger batch exercising the multi-step (2-tile) batch grid.
    batch2 = 384
    x2 = jax.random.normal(k_x2, (batch2, input_dim), jnp.float32)
    out2 = jax.block_until_ready(mlp_apply(x2, flat, meta))
    ref2 = mlp_reference(layers, x2)
    assert out2.shape == (batch2, 1), out2.shape
    assert jnp.allclose(out2, ref2, atol=1e-5, rtol=1e-4)

    # Batch not divisible by the tile: exercises batch zero-padding path.
    batch3 = 100
    x3 = jax.random.normal(k_x3, (batch3, input_dim), jnp.float32)
    out3 = jax.block_until_ready(mlp_apply(x3, flat, meta))
    ref3 = mlp_reference(layers, x3)
    assert out3.shape == (batch3, 1), out3.shape
    assert jnp.allclose(out3, ref3, atol=1e-5, rtol=1e-4)

    # No-output-layer variant (output_layer=False): returns last hidden.
    layers_no = init_mlp_params(k_p2, input_dim, embed_dims, output_layer=False)
    flat_no, meta_no = prepare_fused_params(layers_no, input_dim)
    out4 = jax.block_until_ready(mlp_apply(x, flat_no, meta_no))
    ref4 = mlp_reference(layers_no, x)
    assert out4.shape == (batch, embed_dims[-1]), out4.shape
    assert jnp.allclose(out4, ref4, atol=1e-5, rtol=1e-4)

    print("KERNEL_OK")
</pallas_src>

<mosaic_0001>
module attributes {stable_mosaic.version = 11 : i64} {
  func.func @kernel(%arg0: i32, %arg1: memref<8x128xf32, #tpu.memory_space<vmem>>, %arg2: memref<128x128xf32, #tpu.memory_space<vmem>>, %arg3: memref<1x128xf32, #tpu.memory_space<vmem>>, %arg4: memref<128x128xf32, #tpu.memory_space<vmem>>, %arg5: memref<1x128xf32, #tpu.memory_space<vmem>>, %arg6: memref<128x128xf32, #tpu.memory_space<vmem>>, %arg7: memref<1x128xf32, #tpu.memory_space<vmem>>, %arg8: memref<8x128xf32, #tpu.memory_space<vmem>>) attributes {dimension_semantics = [#tpu.dimension_semantics<parallel>], iteration_bounds = array<i64: 1>, scalar_prefetch = 0 : i64, scratch_operands = 0 : i64, tpu.core_type = #tpu.core_type<tc>, window_params = [{transform_indices = @transform_0, window_bounds = array<i64: 8, 128>}, {pipeline_mode = #tpu.pipeline_mode<synchronous>, transform_indices = @transform_1, window_bounds = array<i64: 128, 128>}, {pipeline_mode = #tpu.pipeline_mode<synchronous>, transform_indices = @transform_2, window_bounds = array<i64: 1, 128>}, {pipeline_mode = #tpu.pipeline_mode<synchronous>, transform_indices = @transform_3, window_bounds = array<i64: 128, 128>}, {pipeline_mode = #tpu.pipeline_mode<synchronous>, transform_indices = @transform_4, window_bounds = array<i64: 1, 128>}, {pipeline_mode = #tpu.pipeline_mode<synchronous>, transform_indices = @transform_5, window_bounds = array<i64: 128, 128>}, {pipeline_mode = #tpu.pipeline_mode<synchronous>, transform_indices = @transform_6, window_bounds = array<i64: 1, 128>}, {transform_indices = @transform_7, window_bounds = array<i64: 8, 128>}]} {
    %c0 = arith.constant 0 : index
    %c0_0 = arith.constant 0 : index
    %0 = vector.load %arg1[%c0, %c0_0] : memref<8x128xf32, #tpu.memory_space<vmem>>, vector<8x128xf32>
    %c0_1 = arith.constant 0 : index
    %c0_2 = arith.constant 0 : index
    %1 = vector.load %arg2[%c0_1, %c0_2] : memref<128x128xf32, #tpu.memory_space<vmem>>, vector<128x128xf32>
    %cst = arith.constant dense<0.000000e+00> : vector<8x128xf32>
    %2 = tpu.matmul %0, %1, %cst {dimension_numbers = #tpu.dot_dimension_numbers<[1], [0], [0], [1], [0, 0, 1, 1], [], []>} : vector<8x128xf32>, vector<128x128xf32>, vector<8x128xf32> -> vector<8x128xf32>
    %c0_3 = arith.constant 0 : index
    %c0_4 = arith.constant 0 : index
    %3 = vector.load %arg3[%c0_3, %c0_4] : memref<1x128xf32, #tpu.memory_space<vmem>>, vector<1x128xf32>
    %4 = vector.broadcast %3 : vector<1x128xf32> to vector<8x128xf32>
    %5 = arith.addf %2, %4 : vector<8x128xf32>
    %cst_5 = arith.constant 0.000000e+00 : f32
    %6 = vector.broadcast %cst_5 : f32 to vector<8x128xf32>
    %7 = arith.maximumf %5, %6 : vector<8x128xf32>
    %c0_6 = arith.constant 0 : index
    %c0_7 = arith.constant 0 : index
    %8 = vector.load %arg4[%c0_6, %c0_7] : memref<128x128xf32, #tpu.memory_space<vmem>>, vector<128x128xf32>
    %cst_8 = arith.constant dense<0.000000e+00> : vector<8x128xf32>
    %9 = tpu.matmul %7, %8, %cst_8 {dimension_numbers = #tpu.dot_dimension_numbers<[1], [0], [0], [1], [0, 0, 1, 1], [], []>} : vector<8x128xf32>, vector<128x128xf32>, vector<8x128xf32> -> vector<8x128xf32>
    %c0_9 = arith.constant 0 : index
    %c0_10 = arith.constant 0 : index
    %10 = vector.load %arg5[%c0_9, %c0_10] : memref<1x128xf32, #tpu.memory_space<vmem>>, vector<1x128xf32>
    %11 = vector.broadcast %10 : vector<1x128xf32> to vector<8x128xf32>
    %12 = arith.addf %9, %11 : vector<8x128xf32>
    %cst_11 = arith.constant 0.000000e+00 : f32
    %13 = vector.broadcast %cst_11 : f32 to vector<8x128xf32>
    %14 = arith.maximumf %12, %13 : vector<8x128xf32>
    %c0_12 = arith.constant 0 : index
    %c0_13 = arith.constant 0 : index
    %15 = vector.load %arg6[%c0_12, %c0_13] : memref<128x128xf32, #tpu.memory_space<vmem>>, vector<128x128xf32>
    %cst_14 = arith.constant dense<0.000000e+00> : vector<8x128xf32>
    %16 = tpu.matmul %14, %15, %cst_14 {dimension_numbers = #tpu.dot_dimension_numbers<[1], [0], [0], [1], [0, 0, 1, 1], [], []>} : vector<8x128xf32>, vector<128x128xf32>, vector<8x128xf32> -> vector<8x128xf32>
    %c0_15 = arith.constant 0 : index
    %c0_16 = arith.constant 0 : index
    %17 = vector.load %arg7[%c0_15, %c0_16] : memref<1x128xf32, #tpu.memory_space<vmem>>, vector<1x128xf32>
    %18 = vector.broadcast %17 : vector<1x128xf32> to vector<8x128xf32>
    %19 = arith.addf %16, %18 : vector<8x128xf32>
    %c0_17 = arith.constant 0 : index
    %c0_18 = arith.constant 0 : index
    %20 = vector.load %arg8[%c0_17, %c0_18] : memref<8x128xf32, #tpu.memory_space<vmem>>, vector<8x128xf32>
    tpu.vector_store %arg8[%c0_17, %c0_18], %19 {strides = array<i32>} : memref<8x128xf32, #tpu.memory_space<vmem>>, vector<8x128xf32>,
    return
  }
  func.func @transform_0(%arg0: i32) -> (i32, i32) {
    %c0_i32 = arith.constant 0 : i32
    %c0_i32_0 = arith.constant 0 : i32
    return %arg0, %c0_i32 : i32, i32
  }
  func.func @transform_1(%arg0: i32) -> (i32, i32) {
    %c0_i32 = arith.constant 0 : i32
    %c0_i32_0 = arith.constant 0 : i32
    %c0_i32_1 = arith.constant 0 : i32
    return %c0_i32, %c0_i32_0 : i32, i32
  }
  func.func @transform_2(%arg0: i32) -> (i32, i32) {
    %c0_i32 = arith.constant 0 : i32
    %c0_i32_0 = arith.constant 0 : i32
    %c0_i32_1 = arith.constant 0 : i32
    return %c0_i32, %c0_i32_0 : i32, i32
  }
  func.func @transform_3(%arg0: i32) -> (i32, i32) {
    %c0_i32 = arith.constant 0 : i32
    %c0_i32_0 = arith.constant 0 : i32
    %c0_i32_1 = arith.constant 0 : i32
    return %c0_i32, %c0_i32_0 : i32, i32
  }
  func.func @transform_4(%arg0: i32) -> (i32, i32) {
    %c0_i32 = arith.constant 0 : i32
    %c0_i32_0 = arith.constant 0 : i32
    %c0_i32_1 = arith.constant 0 : i32
    return %c0_i32, %c0_i32_0 : i32, i32
  }
  func.func @transform_5(%arg0: i32) -> (i32, i32) {
    %c0_i32 = arith.constant 0 : i32
    %c0_i32_0 = arith.constant 0 : i32
    %c0_i32_1 = arith.constant 0 : i32
    return %c0_i32, %c0_i32_0 : i32, i32
  }
  func.func @transform_6(%arg0: i32) -> (i32, i32) {
    %c0_i32 = arith.constant 0 : i32
    %c0_i32_0 = arith.constant 0 : i32
    %c0_i32_1 = arith.constant 0 : i32
    return %c0_i32, %c0_i32_0 : i32, i32
  }
  func.func @transform_7(%arg0: i32) -> (i32, i32) {
    %c0_i32 = arith.constant 0 : i32
    %c0_i32_0 = arith.constant 0 : i32
    return %arg0, %c0_i32 : i32, i32
  }
}

module attributes {stable_mosaic.version = 11 : i64} {
  func.func @kernel(%arg0: i32, %arg1: memref<8x128xf32, #tpu.memory_space<vmem>>, %arg2: memref<128x128xf32, #tpu.memory_space<vmem>>, %arg3: memref<1x128xf32, #tpu.memory_space<vmem>>, %arg4: memref<128x128xf32, #tpu.memory_space<vmem>>, %arg5: memref<1x128xf32, #tpu.memory_space<vmem>>, %arg6: memref<128x128xf32, #tpu.memory_space<vmem>>, %arg7: memref<1x128xf32, #tpu.memory_space<vmem>>, %arg8: memref<8x128xf32, #tpu.memory_space<vmem>>) attributes {dimension_semantics = [#tpu.dimension_semantics<parallel>], iteration_bounds = array<i64: 1>, scalar_prefetch = 0 : i64, scratch_operands = 0 : i64, tpu.core_type = #tpu.core_type<tc>, window_params = [{transform_indices = @transform_0, window_bounds = array<i64: 8, 128>}, {pipeline_mode = #tpu.pipeline_mode<synchronous>, transform_indices = @transform_1, window_bounds = array<i64: 128, 128>}, {pipeline_mode = #tpu.pipeline_mode<synchronous>, transform_indices = @transform_2, window_bounds = array<i64: 1, 128>}, {pipeline_mode = #tpu.pipeline_mode<synchronous>, transform_indices = @transform_3, window_bounds = array<i64: 128, 128>}, {pipeline_mode = #tpu.pipeline_mode<synchronous>, transform_indices = @transform_4, window_bounds = array<i64: 1, 128>}, {pipeline_mode = #tpu.pipeline_mode<synchronous>, transform_indices = @transform_5, window_bounds = array<i64: 128, 128>}, {pipeline_mode = #tpu.pipeline_mode<synchronous>, transform_indices = @transform_6, window_bounds = array<i64: 1, 128>}, {transform_indices = @transform_7, window_bounds = array<i64: 8, 128>}]} {
    %c0 = arith.constant 0 : index
    %c0_0 = arith.constant 0 : index
    %0 = vector.load %arg1[%c0, %c0_0] : memref<8x128xf32, #tpu.memory_space<vmem>>, vector<8x128xf32>
    %c0_1 = arith.constant 0 : index
    %c0_2 = arith.constant 0 : index
    %1 = vector.load %arg2[%c0_1, %c0_2] : memref<128x128xf32, #tpu.memory_space<vmem>>, vector<128x128xf32>
    %cst = arith.constant dense<0.000000e+00> : vector<8x128xf32>
    %2 = tpu.matmul %0, %1, %cst {dimension_numbers = #tpu.dot_dimension_numbers<[1], [0], [0], [1], [0, 0, 1, 1], [], []>} : vector<8x128xf32>, vector<128x128xf32>, vector<8x128xf32> -> vector<8x128xf32>
    %c0_3 = arith.constant 0 : index
    %c0_4 = arith.constant 0 : index
    %3 = vector.load %arg3[%c0_3, %c0_4] : memref<1x128xf32, #tpu.memory_space<vmem>>, vector<1x128xf32>
    %4 = vector.broadcast %3 : vector<1x128xf32> to vector<8x128xf32>
    %5 = arith.addf %2, %4 : vector<8x128xf32>
    %cst_5 = arith.constant 0.000000e+00 : f32
    %6 = vector.broadcast %cst_5 : f32 to vector<8x128xf32>
    %7 = arith.maximumf %5, %6 : vector<8x128xf32>
    %c0_6 = arith.constant 0 : index
    %c0_7 = arith.constant 0 : index
    %8 = vector.load %arg4[%c0_6, %c0_7] : memref<128x128xf32, #tpu.memory_space<vmem>>, vector<128x128xf32>
    %cst_8 = arith.constant dense<0.000000e+00> : vector<8x128xf32>
    %9 = tpu.matmul %7, %8, %cst_8 {dimension_numbers = #tpu.dot_dimension_numbers<[1], [0], [0], [1], [0, 0, 1, 1], [], []>} : vector<8x128xf32>, vector<128x128xf32>, vector<8x128xf32> -> vector<8x128xf32>
    %c0_9 = arith.constant 0 : index
    %c0_10 = arith.constant 0 : index
    %10 = vector.load %arg5[%c0_9, %c0_10] : memref<1x128xf32, #tpu.memory_space<vmem>>, vector<1x128xf32>
    %11 = vector.broadcast %10 : vector<1x128xf32> to vector<8x128xf32>
    %12 = arith.addf %9, %11 : vector<8x128xf32>
    %cst_11 = arith.constant 0.000000e+00 : f32
    %13 = vector.broadcast %cst_11 : f32 to vector<8x128xf32>
    %14 = arith.maximumf %12, %13 : vector<8x128xf32>
    %c0_12 = arith.constant 0 : index
    %c0_13 = arith.constant 0 : index
    %15 = vector.load %arg6[%c0_12, %c0_13] : memref<128x128xf32, #tpu.memory_space<vmem>>, vector<128x128xf32>
    %cst_14 = arith.constant dense<0.000000e+00> : vector<8x128xf32>
    %16 = tpu.matmul %14, %15, %cst_14 {dimension_numbers = #tpu.dot_dimension_numbers<[1], [0], [0], [1], [0, 0, 1, 1], [], []>} : vector<8x128xf32>, vector<128x128xf32>, vector<8x128xf32> -> vector<8x128xf32>
    %c0_15 = arith.constant 0 : index
    %c0_16 = arith.constant 0 : index
    %17 = vector.load %arg7[%c0_15, %c0_16] : memref<1x128xf32, #tpu.memory_space<vmem>>, vector<1x128xf32>
    %18 = vector.broadcast %17 : vector<1x128xf32> to vector<8x128xf32>
    %19 = arith.addf %16, %18 : vector<8x128xf32>
    %c0_17 = arith.constant 0 : index
    %c0_18 = arith.constant 0 : index
    %20 = vector.load %arg8[%c0_17, %c0_18] : memref<8x128xf32, #tpu.memory_space<vmem>>, vector<8x128xf32>
    tpu.vector_store %arg8[%c0_17, %c0_18], %19 {strides = array<i32>} : memref<8x128xf32, #tpu.memory_space<vmem>>, vector<8x128xf32>,
    return
  }
  func.func @transform_0(%arg0: i32) -> (i32, i32) {
    %c0_i32 = arith.constant 0 : i32
    %c0_i32_0 = arith.constant 0 : i32
    return %arg0, %c0_i32 : i32, i32
  }
  func.func @transform_1(%arg0: i32) -> (i32, i32) {
    %c0_i32 = arith.constant 0 : i32
    %c0_i32_0 = arith.constant 0 : i32
    %c0_i32_1 = arith.constant 0 : i32
    return %c0_i32, %c0_i32_0 : i32, i32
  }
  func.func @transform_2(%arg0: i32) -> (i32, i32) {
    %c0_i32 = arith.constant 0 : i32
    %c0_i32_0 = arith.constant 0 : i32
    %c0_i32_1 = arith.constant 0 : i32
    return %c0_i32, %c0_i32_0 : i32, i32
  }
  func.func @transform_3(%arg0: i32) -> (i32, i32) {
    %c0_i32 = arith.constant 0 : i32
    %c0_i32_0 = arith.constant 0 : i32
    %c0_i32_1 = arith.constant 0 : i32
    return %c0_i32, %c0_i32_0 : i32, i32
  }
  func.func @transform_4(%arg0: i32) -> (i32, i32) {
    %c0_i32 = arith.constant 0 : i32
    %c0_i32_0 = arith.constant 0 : i32
    %c0_i32_1 = arith.constant 0 : i32
    return %c0_i32, %c0_i32_0 : i32, i32
  }
  func.func @transform_5(%arg0: i32) -> (i32, i32) {
    %c0_i32 = arith.constant 0 : i32
    %c0_i32_0 = arith.constant 0 : i32
    %c0_i32_1 = arith.constant 0 : i32
    return %c0_i32, %c0_i32_0 : i32, i32
  }
  func.func @transform_6(%arg0: i32) -> (i32, i32) {
    %c0_i32 = arith.constant 0 : i32
    %c0_i32_0 = arith.constant 0 : i32
    %c0_i32_1 = arith.constant 0 : i32
    return %c0_i32, %c0_i32_0 : i32, i32
  }
  func.func @transform_7(%arg0: i32) -> (i32, i32) {
    %c0_i32 = arith.constant 0 : i32
    %c0_i32_0 = arith.constant 0 : i32
    return %arg0, %c0_i32 : i32, i32
  }
}

</mosaic_0001>

<bundles_post_ra>
// kernel: _mlp_forward.1
= control target key start
LH: loop header
LB: loop body
LE: loop exit
PB: predicated region body
PF: predicated region fallthrough
CT: control target
= control target key end

     0   :  { %12 = vsyncpa [#allocation3], 0  ;;  %s711_s0 = inlined_call_operand.vmem [shape: f32[8,128], index: 0, kind: input, shape index: {}]   ;;  %s712_s1 = inlined_call_operand.hbm [shape: f32[128,128], index: 1, kind: input, shape index: {}]   ;;  %s713_s2 = inlined_call_operand.vmem [shape: f32[1,128], index: 2, kind: input, shape index: {}]   ;;  %s714_s3 = inlined_call_operand.hbm [shape: f32[128,128], index: 3, kind: input, shape index: {}]   ;;  %s715_s4 = inlined_call_operand.vmem [shape: f32[1,128], index: 4, kind: input, shape index: {}]   ;;  %s716_s5 = inlined_call_operand.hbm [shape: f32[128,128], index: 5, kind: input, shape index: {}]   ;;  %s717_s6 = inlined_call_operand.vmem [shape: f32[1,128], index: 6, kind: input, shape index: {}]   ;;  %s718_s7 = inlined_call_operand.vmem [shape: f32[8,128], index: 7, kind: output, shape index: {}]  }
   0x1   :  { %13 = vsyncpa [#allocation5], 0  ;;  %s586_s24 = smov [#allocation4]   ;;  %s587_s26 = smov [#allocation2]  }
   0x2   :  { %s35_s25 = sshll.u32 %s586_s24, 4  ;;  %s21_s27 = sshll.u32 %s587_s26, 4  ;;  %s36_s25 = int_to_ptr.vmem [resolvable:$true] %s35_s25  ;;  %s22_s27 = int_to_ptr.vmem [resolvable:$true] %s21_s27 }
   0x3   :  { %s530_s28 = scalar_lea.vmem %s36_s25, 2048  ;;  %p535_p1 = scmp.lt.s32.totalorder %s36_s25, %s36_s25 }
   0x4   :  { %p531_p0 = scmp.ne.s32.totalorder %s36_s25, %s530_s28  ;;  %p536_p2 = scmp.lt.s32.totalorder %s530_s28, %s530_s28 }
   0x6   :  { %p537_p3 = por %p536_p2, %p535_p1 }
   0x8   :  { %p538_p4 = pnand %p537_p3, %p531_p0 }
   0xa   :  { %541 = shalt.err (!%p538_p4)
}
   0xb   :  { %s588_s29 = smov 128   ;;  %s589_s30 = smov 8  }
   0xc   :  { %41 = dma.hbm_to_vmem [thread:$0]  %s714_s3, 2048, %s36_s25, [#allocation5], %s588_s29, %s588_s29, %s589_s30  }
   0xd   :  { %s550_s10 = scalar_lea.vmem %s22_s27, 2048  ;;  %p555_p6 = scmp.lt.s32.totalorder %s22_s27, %s22_s27 }
   0xe   :  { %p551_p5 = scmp.ne.s32.totalorder %s22_s27, %s550_s10  ;;  %p556_p7 = scmp.lt.s32.totalorder %s550_s10, %s550_s10 }
  0x10   :  { %p557_p8 = por %p556_p7, %p555_p6 }
  0x12   :  { %p558_p9 = pnand %p557_p8, %p551_p5 }
  0x14   :  { %561 = shalt.err (!%p558_p9)
}
  0x15   :  { %27 = dma.hbm_to_vmem [thread:$0]  %s712_s1, 2048, %s22_s27, [#allocation3], %s588_s29, %s588_s29, %s589_s30  }
  0x16   :  { %s590_s13 = smov [#allocation6]  }
  0x17   :  { %s49_s14 = sshll.u32 %s590_s13, 4  ;;  %s50_s14 = int_to_ptr.vmem [resolvable:$true] %s49_s14 }
  0x18   :  { %s570_s15 = scalar_lea.vmem %s50_s14, 2048  ;;  %p575_p11 = scmp.lt.s32.totalorder %s50_s14, %s50_s14 }
  0x19   :  { %p571_p10 = scmp.ne.s32.totalorder %s50_s14, %s570_s15  ;;  %p576_p12 = scmp.lt.s32.totalorder %s570_s15, %s570_s15 }
  0x1b   :  { %p577_p13 = por %p576_p12, %p575_p11 }
  0x1d   :  { %p578_p0 = pnand %p577_p13, %p571_p10 }
  0x1f   :  { %581 = shalt.err (!%p578_p0)
}
  0x20   :  { %55 = dma.hbm_to_vmem [thread:$0]  %s716_s5, 2048, %s50_s14, [#allocation5], %s588_s29, %s588_s29, %s589_s30  }
  0x21   :  { %582 = dma.done.wait [#allocation3], 2048  }
  0x22   :  { %583 = vsyncadd [#allocation3], 4294965248 }
  0x23   :  { %584 = dma.done.wait [#allocation5], 4096  }
  0x24   :  { %585 = vsyncadd [#allocation5], 4294963200  ;;  %v591_v0 = vmov 0.0   ;;  %vm592_vm0 = vmmov 0   ;;  %v83_v1 = vld [vmem:[#allocation2 + $0x78] sm:$0xff]  ;;  %v82_v2 = vld [vmem:[#allocation2 + $0x70] sm:$0xff] }
  0x25   :  { %410 = vmatprep.subr.mxu0 %v591_v0  ;;  %442 = vmatprep.mubr.msk.f32.mxu0 %vm592_vm0, %v591_v0  ;;  %v81_v3 = vld [vmem:[#allocation2 + $0x68] sm:$0xff]  ;;  %v80_v4 = vld [vmem:[#allocation2 + $0x60] sm:$0xff]  ;;  %v177_v5 = vld [vmem:[#allocation4 + $0x78] sm:$0xff] }
  0x26   :  { %445 = vmatprep.subr.mxu1 %v591_v0  ;;  %477 = vmatprep.mubr.msk.f32.mxu1 %vm592_vm0, %v591_v0  ;;  %v79_v6 = vld [vmem:[#allocation2 + $0x58] sm:$0xff]  ;;  %v176_v7 = vld [vmem:[#allocation4 + $0x70] sm:$0xff]  ;;  %v175_v8 = vld [vmem:[#allocation4 + $0x68] sm:$0xff] }
  0x27   :  { %411 = vmatpush3.msra.mxu0 %v83_v1  ;;  %446 = vmatpush3.msra.mxu1 %v177_v5  ;;  %v78_v9 = vld [vmem:[#allocation2 + $0x50] sm:$0xff]  ;;  %v174_v10 = vld [vmem:[#allocation4 + $0x60] sm:$0xff]  ;;  %v77_v11 = vld [vmem:[#allocation2 + $0x48] sm:$0xff] }
  0x28   :  { %412 = vmatprep.subr.mxu0 %v591_v0  ;;  %447 = vmatprep.subr.mxu1 %v591_v0  ;;  %v173_v12 = vld [vmem:[#allocation4 + $0x58] sm:$0xff]  ;;  %v76_v13 = vld [vmem:[#allocation2 + $0x40] sm:$0xff]  ;;  %v172_v14 = vld [vmem:[#allocation4 + $0x50] sm:$0xff] }
  0x29   :  { %413 = vmatpush3.msra.mxu0 %v82_v2  ;;  %448 = vmatpush3.msra.mxu1 %v176_v7  ;;  %v75_v15 = vld [vmem:[#allocation2 + $0x38] sm:$0xff]  ;;  %v171_v16 = vld [vmem:[#allocation4 + $0x48] sm:$0xff]  ;;  %v74_v17 = vld [vmem:[#allocation2 + $0x30] sm:$0xff] }
  0x2a   :  { %414 = vmatprep.subr.mxu0 %v591_v0  ;;  %449 = vmatprep.subr.mxu1 %v591_v0  ;;  %v170_v18 = vld [vmem:[#allocation4 + $0x40] sm:$0xff]  ;;  %v73_v19 = vld [vmem:[#allocation2 + $0x28] sm:$0xff]  ;;  %v169_v20 = vld [vmem:[#allocation4 + $0x38] sm:$0xff] }
  0x2b   :  { %415 = vmatpush3.msra.mxu0 %v81_v3  ;;  %450 = vmatpush3.msra.mxu1 %v175_v8  ;;  %v72_v21 = vld [vmem:[#allocation2 + $0x20] sm:$0xff]  ;;  %v168_v22 = vld [vmem:[#allocation4 + $0x30] sm:$0xff]  ;;  %v71_v23 = vld [vmem:[#allocation2 + $0x18] sm:$0xff] }
  0x2c   :  { %416 = vmatprep.subr.mxu0 %v591_v0  ;;  %451 = vmatprep.subr.mxu1 %v591_v0  ;;  %v167_v24 = vld [vmem:[#allocation4 + $0x28] sm:$0xff]  ;;  %v70_v25 = vld [vmem:[#allocation2 + $0x10] sm:$0xff]  ;;  %v166_v26 = vld [vmem:[#allocation4 + $0x20] sm:$0xff] }
  0x2d   :  { %417 = vmatpush3.msra.mxu0 %v80_v4  ;;  %452 = vmatpush3.msra.mxu1 %v174_v10  ;;  %v69_v27 = vld [vmem:[#allocation2 + $0x8] sm:$0xff]  ;;  %v165_v28 = vld [vmem:[#allocation4 + $0x18] sm:$0xff]  ;;  %v68_v29 = vld [vmem:[#allocation2] sm:$0xff] }
  0x2e   :  { %418 = vmatprep.subr.mxu0 %v591_v0  ;;  %453 = vmatprep.subr.mxu1 %v591_v0  ;;  %v67_v30 = vld [vmem:[%s711_s0] sm:$0xff]  ;;  %v164_v31 = vld [vmem:[#allocation4 + $0x10] sm:$0xff]  ;;  %v163_v32 = vld [vmem:[#allocation4 + $0x8] sm:$0xff] }
  0x2f   :  { %419 = vmatpush3.msra.mxu0 %v79_v6  ;;  %454 = vmatpush3.msra.mxu1 %v173_v12  ;;  %v162_v33 = vld [vmem:[#allocation4] sm:$0xff]  ;;  %v271_v34 = vld [vmem:[#allocation6 + $0x78] sm:$0xff]  ;;  %v270_v35 = vld [vmem:[#allocation6 + $0x70] sm:$0xff] }
  0x30   :  { %420 = vmatprep.subr.mxu0 %v591_v0  ;;  %455 = vmatprep.subr.mxu1 %v591_v0  ;;  %v269_v36 = vld [vmem:[#allocation6 + $0x68] sm:$0xff]  ;;  %v268_v37 = vld [vmem:[#allocation6 + $0x60] sm:$0xff]  ;;  %v267_v38 = vld [vmem:[#allocation6 + $0x58] sm:$0xff] }
  0x31   :  { %421 = vmatpush3.msra.mxu0 %v78_v9  ;;  %456 = vmatpush3.msra.mxu1 %v172_v14  ;;  %v266_v39 = vld [vmem:[#allocation6 + $0x50] sm:$0xff]  ;;  %v265_v40 = vld [vmem:[#allocation6 + $0x48] sm:$0xff]  ;;  %v264_v41 = vld [vmem:[#allocation6 + $0x40] sm:$0xff] }
  0x32   :  { %422 = vmatprep.subr.mxu0 %v591_v0  ;;  %457 = vmatprep.subr.mxu1 %v591_v0  ;;  %v263_v42 = vld [vmem:[#allocation6 + $0x38] sm:$0xff]  ;;  %v262_v43 = vld [vmem:[#allocation6 + $0x30] sm:$0xff]  ;;  %v261_v44 = vld [vmem:[#allocation6 + $0x28] sm:$0xff] }
  0x33   :  { %423 = vmatpush3.msra.mxu0 %v77_v11  ;;  %458 = vmatpush3.msra.mxu1 %v171_v16  ;;  %v260_v45 = vld [vmem:[#allocation6 + $0x20] sm:$0xff]  ;;  %v259_v46 = vld [vmem:[#allocation6 + $0x18] sm:$0xff]  ;;  %v258_v52 = vld [vmem:[#allocation6 + $0x10] sm:$0xff] }
  0x34   :  { %424 = vmatprep.subr.mxu0 %v591_v0  ;;  %459 = vmatprep.subr.mxu1 %v591_v0  ;;  %v356_v47 = vld [vmem:[%s713_s2] ss:$0 sm:$0xff]  ;;  %v257_v53 = vld [vmem:[#allocation6 + $0x8] sm:$0xff] }
  0x35   :  { %425 = vmatpush3.msra.mxu0 %v76_v13  ;;  %460 = vmatpush3.msra.mxu1 %v170_v18  ;;  %v256_v54 = vld [vmem:[#allocation6] sm:$0xff] }
  0x36   :  { %426 = vmatprep.subr.mxu0 %v591_v0  ;;  %461 = vmatprep.subr.mxu1 %v591_v0  ;;  %v357_v55 = vld [vmem:[%s715_s4] ss:$0 sm:$0xff] }
  0x37   :  { %427 = vmatpush3.msra.mxu0 %v75_v15  ;;  %462 = vmatpush3.msra.mxu1 %v169_v20  ;;  %v358_v60 = vld [vmem:[%s717_s6] ss:$0 sm:$0xff] }
  0x38   :  { %428 = vmatprep.subr.mxu0 %v591_v0  ;;  %463 = vmatprep.subr.mxu1 %v591_v0 }
  0x39   :  { %429 = vmatpush3.msra.mxu0 %v74_v17  ;;  %464 = vmatpush3.msra.mxu1 %v168_v22 }
  0x3a   :  { %430 = vmatprep.subr.mxu0 %v591_v0  ;;  %465 = vmatprep.subr.mxu1 %v591_v0 }
  0x3b   :  { %431 = vmatpush3.msra.mxu0 %v73_v19  ;;  %466 = vmatpush3.msra.mxu1 %v167_v24 }
  0x3c   :  { %432 = vmatprep.subr.mxu0 %v591_v0  ;;  %467 = vmatprep.subr.mxu1 %v591_v0 }
  0x3d   :  { %433 = vmatpush3.msra.mxu0 %v72_v21  ;;  %468 = vmatpush3.msra.mxu1 %v166_v26 }
  0x3e   :  { %434 = vmatprep.subr.mxu0 %v591_v0  ;;  %469 = vmatprep.subr.mxu1 %v591_v0 }
  0x3f   :  { %435 = vmatpush3.msra.mxu0 %v71_v23  ;;  %470 = vmatpush3.msra.mxu1 %v165_v28 }
  0x40   :  { %436 = vmatprep.subr.mxu0 %v591_v0  ;;  %471 = vmatprep.subr.mxu1 %v591_v0 }
  0x41   :  { %437 = vmatpush3.msra.mxu0 %v70_v25  ;;  %472 = vmatpush3.msra.mxu1 %v164_v31 }
  0x42   :  { %438 = vmatprep.subr.mxu0 %v591_v0  ;;  %473 = vmatprep.subr.mxu1 %v591_v0 }
  0x43   :  { %439 = vmatpush3.msra.mxu0 %v69_v27  ;;  %474 = vmatpush3.msra.mxu1 %v163_v32 }
  0x44   :  { %440 = vmatprep.subr.mxu0 %v591_v0  ;;  %475 = vmatprep.subr.mxu1 %v591_v0 }
  0x45   :  { %441 = vmatpush3.msra.mxu0 %v68_v29  ;;  %476 = vmatpush3.msra.mxu1 %v162_v33 }
  0x46   :  { %443 = vmatmul.mubr.f32.vlgmr.msra.gmra.mxu0 %v67_v30  ;;  %480 = vmatprep.subr.mxu0 %v591_v0 }
  0x47   :  { %512 = vmatprep.mubr.msk.f32.mxu0 %vm592_vm0, %v591_v0  ;;  %481 = vmatpush3.msra.mxu0 %v271_v34 }
  0x48   :  { %482 = vmatprep.subr.mxu0 %v591_v0 }
  0x49   :  { %483 = vmatpush3.msra.mxu0 %v270_v35 }
  0x4a   :  { %484 = vmatprep.subr.mxu0 %v591_v0 }
  0x4b   :  { %485 = vmatpush3.msra.mxu0 %v269_v36 }
  0x4c   :  { %486 = vmatprep.subr.mxu0 %v591_v0 }
  0x4d   :  { %487 = vmatpush3.msra.mxu0 %v268_v37 }
  0x4e   :  { %488 = vmatprep.subr.mxu0 %v591_v0 }
  0x4f   :  { %489 = vmatpush3.msra.mxu0 %v267_v38 }
  0x50   :  { %490 = vmatprep.subr.mxu0 %v591_v0 }
  0x51   :  { %491 = vmatpush3.msra.mxu0 %v266_v39 }
  0x52   :  { %492 = vmatprep.subr.mxu0 %v591_v0 }
  0x53   :  { %493 = vmatpush3.msra.mxu0 %v265_v40 }
  0x54   :  { %494 = vmatprep.subr.mxu0 %v591_v0 }
  0x55   :  { %495 = vmatpush3.msra.mxu0 %v264_v41 }
  0x56   :  { %496 = vmatprep.subr.mxu0 %v591_v0 }
  0x57   :  { %497 = vmatpush3.msra.mxu0 %v263_v42 }
  0x58   :  { %498 = vmatprep.subr.mxu0 %v591_v0 }
  0x59   :  { %499 = vmatpush3.msra.mxu0 %v262_v43 }
  0x5a   :  { %500 = vmatprep.subr.mxu0 %v591_v0 }
  0x5b   :  { %501 = vmatpush3.msra.mxu0 %v261_v44 }
  0x5c   :  { %502 = vmatprep.subr.mxu0 %v591_v0 }
  0x5d   :  { %503 = vmatpush3.msra.mxu0 %v260_v45 }
  0x5e   :  { %504 = vmatprep.subr.mxu0 %v591_v0 }
  0x5f   :  { %505 = vmatpush3.msra.mxu0 %v259_v46 }
  0x60   :  { %506 = vmatprep.subr.mxu0 %v591_v0 }
  0x61   :  { %507 = vmatpush3.msra.mxu0 %v258_v52 }
  0x62   :  { %508 = vmatprep.subr.mxu0 %v591_v0 }
  0x63   :  { %509 = vmatpush3.msra.mxu0 %v257_v53 }
  0x64   :  { %510 = vmatprep.subr.mxu0 %v591_v0 }
  0x65   :  { %511 = vmatpush3.msra.mxu0 %v256_v54 }
 0x106   :  { %v157_v48 = vpop.f32.mrf.mxu0 }
 0x107   :  { %v158_v49 = vadd.f32 %v356_v47, %v157_v48 }
 0x108   :  { %v444_v50 = vpop.f32.mrf.mxu0 }
 0x109   :  { %v161_v51 = vmax.f32 %v158_v49, 0.0 }
 0x10b   :  { %478 = vmatmul.mubr.f32.vlgmr.msra.gmra.mxu1 %v161_v51 }
 0x1cb   :  { %v251_v56 = vpop.f32.mrf.mxu1 }
 0x1cc   :  { %v252_v57 = vadd.f32 %v357_v55, %v251_v56 }
 0x1cd   :  { %v479_v58 = vpop.f32.mrf.mxu1 }
 0x1ce   :  { %v255_v59 = vmax.f32 %v252_v57, 0.0 }
 0x1d0   :  { %513 = vmatmul.mubr.f32.vlgmr.msra.gmra.mxu0 %v255_v59 }
 0x290   :  { %v345_v61 = vpop.f32.mrf.mxu0 }
 0x291   :  { %v346_v62 = vadd.f32 %v358_v60, %v345_v61 }
 0x292   :  { %v514_v63 = vpop.f32.mrf.mxu0 }
 0x293   :  { %349 = vst [vmem:[%s718_s7] sm:$0xff] %v346_v62 }
 0x294   :  { %354 = vsyncpa [#allocation3], 1 }
 0x295   :  { %355 = vsyncpa [#allocation5], 1 }

// kernel: _mlp_forward.1
= control target key start
LH: loop header
LB: loop body
LE: loop exit
PB: predicated region body
PF: predicated region fallthrough
CT: control target
= control target key end

     0   :  { %12 = vsyncpa [#allocation3], 0  ;;  %s711_s0 = inlined_call_operand.vmem [shape: f32[8,128], index: 0, kind: input, shape index: {}]   ;;  %s712_s1 = inlined_call_operand.hbm [shape: f32[128,128], index: 1, kind: input, shape index: {}]   ;;  %s713_s2 = inlined_call_operand.vmem [shape: f32[1,128], index: 2, kind: input, shape index: {}]   ;;  %s714_s3 = inlined_call_operand.hbm [shape: f32[128,128], index: 3, kind: input, shape index: {}]   ;;  %s715_s4 = inlined_call_operand.vmem [shape: f32[1,128], index: 4, kind: input, shape index: {}]   ;;  %s716_s5 = inlined_call_operand.hbm [shape: f32[128,128], index: 5, kind: input, shape index: {}]   ;;  %s717_s6 = inlined_call_operand.vmem [shape: f32[1,128], index: 6, kind: input, shape index: {}]   ;;  %s718_s7 = inlined_call_operand.vmem [shape: f32[8,128], index: 7, kind: output, shape index: {}]  }
   0x1   :  { %13 = vsyncpa [#allocation5], 0  ;;  %s586_s24 = smov [#allocation4]   ;;  %s587_s26 = smov [#allocation2]  }
   0x2   :  { %s35_s25 = sshll.u32 %s586_s24, 4  ;;  %s21_s27 = sshll.u32 %s587_s26, 4  ;;  %s36_s25 = int_to_ptr.vmem [resolvable:$true] %s35_s25  ;;  %s22_s27 = int_to_ptr.vmem [resolvable:$true] %s21_s27 }
   0x3   :  { %s530_s28 = scalar_lea.vmem %s36_s25, 2048  ;;  %p535_p1 = scmp.lt.s32.totalorder %s36_s25, %s36_s25 }
   0x4   :  { %p531_p0 = scmp.ne.s32.totalorder %s36_s25, %s530_s28  ;;  %p536_p2 = scmp.lt.s32.totalorder %s530_s28, %s530_s28 }
   0x6   :  { %p537_p3 = por %p536_p2, %p535_p1 }
   0x8   :  { %p538_p4 = pnand %p537_p3, %p531_p0 }
   0xa   :  { %541 = shalt.err (!%p538_p4)
}
   0xb   :  { %s588_s29 = smov 128   ;;  %s589_s30 = smov 8  }
   0xc   :  { %41 = dma.hbm_to_vmem [thread:$0]  %s714_s3, 2048, %s36_s25, [#allocation5], %s588_s29, %s588_s29, %s589_s30  }
   0xd   :  { %s550_s10 = scalar_lea.vmem %s22_s27, 2048  ;;  %p555_p6 = scmp.lt.s32.totalorder %s22_s27, %s22_s27 }
   0xe   :  { %p551_p5 = scmp.ne.s32.totalorder %s22_s27, %s550_s10  ;;  %p556_p7 = scmp.lt.s32.totalorder %s550_s10, %s550_s10 }
  0x10   :  { %p557_p8 = por %p556_p7, %p555_p6 }
  0x12   :  { %p558_p9 = pnand %p557_p8, %p551_p5 }
  0x14   :  { %561 = shalt.err (!%p558_p9)
}
  0x15   :  { %27 = dma.hbm_to_vmem [thread:$0]  %s712_s1, 2048, %s22_s27, [#allocation3], %s588_s29, %s588_s29, %s589_s30  }
  0x16   :  { %s590_s13 = smov [#allocation6]  }
  0x17   :  { %s49_s14 = sshll.u32 %s590_s13, 4  ;;  %s50_s14 = int_to_ptr.vmem [resolvable:$true] %s49_s14 }
  0x18   :  { %s570_s15 = scalar_lea.vmem %s50_s14, 2048  ;;  %p575_p11 = scmp.lt.s32.totalorder %s50_s14, %s50_s14 }
  0x19   :  { %p571_p10 = scmp.ne.s32.totalorder %s50_s14, %s570_s15  ;;  %p576_p12 = scmp.lt.s32.totalorder %s570_s15, %s570_s15 }
  0x1b   :  { %p577_p13 = por %p576_p12, %p575_p11 }
  0x1d   :  { %p578_p0 = pnand %p577_p13, %p571_p10 }
  0x1f   :  { %581 = shalt.err (!%p578_p0)
}
  0x20   :  { %55 = dma.hbm_to_vmem [thread:$0]  %s716_s5, 2048, %s50_s14, [#allocation5], %s588_s29, %s588_s29, %s589_s30  }
  0x21   :  { %582 = dma.done.wait [#allocation3], 2048  }
  0x22   :  { %583 = vsyncadd [#allocation3], 4294965248 }
  0x23   :  { %584 = dma.done.wait [#allocation5], 4096  }
  0x24   :  { %585 = vsyncadd [#allocation5], 4294963200  ;;  %v591_v0 = vmov 0.0   ;;  %vm592_vm0 = vmmov 0   ;;  %v83_v1 = vld [vmem:[#allocation2 + $0x78] sm:$0xff]  ;;  %v82_v2 = vld [vmem:[#allocation2 + $0x70] sm:$0xff] }
  0x25   :  { %410 = vmatprep.subr.mxu0 %v591_v0  ;;  %442 = vmatprep.mubr.msk.f32.mxu0 %vm592_vm0, %v591_v0  ;;  %v81_v3 = vld [vmem:[#allocation2 + $0x68] sm:$0xff]  ;;  %v80_v4 = vld [vmem:[#allocation2 + $0x60] sm:$0xff]  ;;  %v177_v5 = vld [vmem:[#allocation4 + $0x78] sm:$0xff] }
  0x26   :  { %445 = vmatprep.subr.mxu1 %v591_v0  ;;  %477 = vmatprep.mubr.msk.f32.mxu1 %vm592_vm0, %v591_v0  ;;  %v79_v6 = vld [vmem:[#allocation2 + $0x58] sm:$0xff]  ;;  %v176_v7 = vld [vmem:[#allocation4 + $0x70] sm:$0xff]  ;;  %v175_v8 = vld [vmem:[#allocation4 + $0x68] sm:$0xff] }
  0x27   :  { %411 = vmatpush3.msra.mxu0 %v83_v1  ;;  %446 = vmatpush3.msra.mxu1 %v177_v5  ;;  %v78_v9 = vld [vmem:[#allocation2 + $0x50] sm:$0xff]  ;;  %v174_v10 = vld [vmem:[#allocation4 + $0x60] sm:$0xff]  ;;  %v77_v11 = vld [vmem:[#allocation2 + $0x48] sm:$0xff] }
  0x28   :  { %412 = vmatprep.subr.mxu0 %v591_v0  ;;  %447 = vmatprep.subr.mxu1 %v591_v0  ;;  %v173_v12 = vld [vmem:[#allocation4 + $0x58] sm:$0xff]  ;;  %v76_v13 = vld [vmem:[#allocation2 + $0x40] sm:$0xff]  ;;  %v172_v14 = vld [vmem:[#allocation4 + $0x50] sm:$0xff] }
  0x29   :  { %413 = vmatpush3.msra.mxu0 %v82_v2  ;;  %448 = vmatpush3.msra.mxu1 %v176_v7  ;;  %v75_v15 = vld [vmem:[#allocation2 + $0x38] sm:$0xff]  ;;  %v171_v16 = vld [vmem:[#allocation4 + $0x48] sm:$0xff]  ;;  %v74_v17 = vld [vmem:[#allocation2 + $0x30] sm:$0xff] }
  0x2a   :  { %414 = vmatprep.subr.mxu0 %v591_v0  ;;  %449 = vmatprep.subr.mxu1 %v591_v0  ;;  %v170_v18 = vld [vmem:[#allocation4 + $0x40] sm:$0xff]  ;;  %v73_v19 = vld [vmem:[#allocation2 + $0x28] sm:$0xff]  ;;  %v169_v20 = vld [vmem:[#allocation4 + $0x38] sm:$0xff] }
  0x2b   :  { %415 = vmatpush3.msra.mxu0 %v81_v3  ;;  %450 = vmatpush3.msra.mxu1 %v175_v8  ;;  %v72_v21 = vld [vmem:[#allocation2 + $0x20] sm:$0xff]  ;;  %v168_v22 = vld [vmem:[#allocation4 + $0x30] sm:$0xff]  ;;  %v71_v23 = vld [vmem:[#allocation2 + $0x18] sm:$0xff] }
  0x2c   :  { %416 = vmatprep.subr.mxu0 %v591_v0  ;;  %451 = vmatprep.subr.mxu1 %v591_v0  ;;  %v167_v24 = vld [vmem:[#allocation4 + $0x28] sm:$0xff]  ;;  %v70_v25 = vld [vmem:[#allocation2 + $0x10] sm:$0xff]  ;;  %v166_v26 = vld [vmem:[#allocation4 + $0x20] sm:$0xff] }
  0x2d   :  { %417 = vmatpush3.msra.mxu0 %v80_v4  ;;  %452 = vmatpush3.msra.mxu1 %v174_v10  ;;  %v69_v27 = vld [vmem:[#allocation2 + $0x8] sm:$0xff]  ;;  %v165_v28 = vld [vmem:[#allocation4 + $0x18] sm:$0xff]  ;;  %v68_v29 = vld [vmem:[#allocation2] sm:$0xff] }
  0x2e   :  { %418 = vmatprep.subr.mxu0 %v591_v0  ;;  %453 = vmatprep.subr.mxu1 %v591_v0  ;;  %v67_v30 = vld [vmem:[%s711_s0] sm:$0xff]  ;;  %v164_v31 = vld [vmem:[#allocation4 + $0x10] sm:$0xff]  ;;  %v163_v32 = vld [vmem:[#allocation4 + $0x8] sm:$0xff] }
  0x2f   :  { %419 = vmatpush3.msra.mxu0 %v79_v6  ;;  %454 = vmatpush3.msra.mxu1 %v173_v12  ;;  %v162_v33 = vld [vmem:[#allocation4] sm:$0xff]  ;;  %v271_v34 = vld [vmem:[#allocation6 + $0x78] sm:$0xff]  ;;  %v270_v35 = vld [vmem:[#allocation6 + $0x70] sm:$0xff] }
  0x30   :  { %420 = vmatprep.subr.mxu0 %v591_v0  ;;  %455 = vmatprep.subr.mxu1 %v591_v0  ;;  %v269_v36 = vld [vmem:[#allocation6 + $0x68] sm:$0xff]  ;;  %v268_v37 = vld [vmem:[#allocation6 + $0x60] sm:$0xff]  ;;  %v267_v38 = vld [vmem:[#allocation6 + $0x58] sm:$0xff] }
  0x31   :  { %421 = vmatpush3.msra.mxu0 %v78_v9  ;;  %456 = vmatpush3.msra.mxu1 %v172_v14  ;;  %v266_v39 = vld [vmem:[#allocation6 + $0x50] sm:$0xff]  ;;  %v265_v40 = vld [vmem:[#allocation6 + $0x48] sm:$0xff]  ;;  %v264_v41 = vld [vmem:[#allocation6 + $0x40] sm:$0xff] }
  0x32   :  { %422 = vmatprep.subr.mxu0 %v591_v0  ;;  %457 = vmatprep.subr.mxu1 %v591_v0  ;;  %v263_v42 = vld [vmem:[#allocation6 + $0x38] sm:$0xff]  ;;  %v262_v43 = vld [vmem:[#allocation6 + $0x30] sm:$0xff]  ;;  %v261_v44 = vld [vmem:[#allocation6 + $0x28] sm:$0xff] }
  0x33   :  { %423 = vmatpush3.msra.mxu0 %v77_v11  ;;  %458 = vmatpush3.msra.mxu1 %v171_v16  ;;  %v260_v45 = vld [vmem:[#allocation6 + $0x20] sm:$0xff]  ;;  %v259_v46 = vld [vmem:[#allocation6 + $0x18] sm:$0xff]  ;;  %v258_v52 = vld [vmem:[#allocation6 + $0x10] sm:$0xff] }
  0x34   :  { %424 = vmatprep.subr.mxu0 %v591_v0  ;;  %459 = vmatprep.subr.mxu1 %v591_v0  ;;  %v356_v47 = vld [vmem:[%s713_s2] ss:$0 sm:$0xff]  ;;  %v257_v53 = vld [vmem:[#allocation6 + $0x8] sm:$0xff] }
  0x35   :  { %425 = vmatpush3.msra.mxu0 %v76_v13  ;;  %460 = vmatpush3.msra.mxu1 %v170_v18  ;;  %v256_v54 = vld [vmem:[#allocation6] sm:$0xff] }
  0x36   :  { %426 = vmatprep.subr.mxu0 %v591_v0  ;;  %461 = vmatprep.subr.mxu1 %v591_v0  ;;  %v357_v55 = vld [vmem:[%s715_s4] ss:$0 sm:$0xff] }
  0x37   :  { %427 = vmatpush3.msra.mxu0 %v75_v15  ;;  %462 = vmatpush3.msra.mxu1 %v169_v20  ;;  %v358_v60 = vld [vmem:[%s717_s6] ss:$0 sm:$0xff] }
  0x38   :  { %428 = vmatprep.subr.mxu0 %v591_v0  ;;  %463 = vmatprep.subr.mxu1 %v591_v0 }
  0x39   :  { %429 = vmatpush3.msra.mxu0 %v74_v17  ;;  %464 = vmatpush3.msra.mxu1 %v168_v22 }
  0x3a   :  { %430 = vmatprep.subr.mxu0 %v591_v0  ;;  %465 = vmatprep.subr.mxu1 %v591_v0 }
  0x3b   :  { %431 = vmatpush3.msra.mxu0 %v73_v19  ;;  %466 = vmatpush3.msra.mxu1 %v167_v24 }
  0x3c   :  { %432 = vmatprep.subr.mxu0 %v591_v0  ;;  %467 = vmatprep.subr.mxu1 %v591_v0 }
  0x3d   :  { %433 = vmatpush3.msra.mxu0 %v72_v21  ;;  %468 = vmatpush3.msra.mxu1 %v166_v26 }
  0x3e   :  { %434 = vmatprep.subr.mxu0 %v591_v0  ;;  %469 = vmatprep.subr.mxu1 %v591_v0 }
  0x3f   :  { %435 = vmatpush3.msra.mxu0 %v71_v23  ;;  %470 = vmatpush3.msra.mxu1 %v165_v28 }
  0x40   :  { %436 = vmatprep.subr.mxu0 %v591_v0  ;;  %471 = vmatprep.subr.mxu1 %v591_v0 }
  0x41   :  { %437 = vmatpush3.msra.mxu0 %v70_v25  ;;  %472 = vmatpush3.msra.mxu1 %v164_v31 }
  0x42   :  { %438 = vmatprep.subr.mxu0 %v591_v0  ;;  %473 = vmatprep.subr.mxu1 %v591_v0 }
  0x43   :  { %439 = vmatpush3.msra.mxu0 %v69_v27  ;;  %474 = vmatpush3.msra.mxu1 %v163_v32 }
  0x44   :  { %440 = vmatprep.subr.mxu0 %v591_v0  ;;  %475 = vmatprep.subr.mxu1 %v591_v0 }
  0x45   :  { %441 = vmatpush3.msra.mxu0 %v68_v29  ;;  %476 = vmatpush3.msra.mxu1 %v162_v33 }
  0x46   :  { %443 = vmatmul.mubr.f32.vlgmr.msra.gmra.mxu0 %v67_v30  ;;  %480 = vmatprep.subr.mxu0 %v591_v0 }
  0x47   :  { %512 = vmatprep.mubr.msk.f32.mxu0 %vm592_vm0, %v591_v0  ;;  %481 = vmatpush3.msra.mxu0 %v271_v34 }
  0x48   :  { %482 = vmatprep.subr.mxu0 %v591_v0 }
  0x49   :  { %483 = vmatpush3.msra.mxu0 %v270_v35 }
  0x4a   :  { %484 = vmatprep.subr.mxu0 %v591_v0 }
  0x4b   :  { %485 = vmatpush3.msra.mxu0 %v269_v36 }
  0x4c   :  { %486 = vmatprep.subr.mxu0 %v591_v0 }
  0x4d   :  { %487 = vmatpush3.msra.mxu0 %v268_v37 }
  0x4e   :  { %488 = vmatprep.subr.mxu0 %v591_v0 }
  0x4f   :  { %489 = vmatpush3.msra.mxu0 %v267_v38 }
  0x50   :  { %490 = vmatprep.subr.mxu0 %v591_v0 }
  0x51   :  { %491 = vmatpush3.msra.mxu0 %v266_v39 }
  0x52   :  { %492 = vmatprep.subr.mxu0 %v591_v0 }
  0x53   :  { %493 = vmatpush3.msra.mxu0 %v265_v40 }
  0x54   :  { %494 = vmatprep.subr.mxu0 %v591_v0 }
  0x55   :  { %495 = vmatpush3.msra.mxu0 %v264_v41 }
  0x56   :  { %496 = vmatprep.subr.mxu0 %v591_v0 }
  0x57   :  { %497 = vmatpush3.msra.mxu0 %v263_v42 }
  0x58   :  { %498 = vmatprep.subr.mxu0 %v591_v0 }
  0x59   :  { %499 = vmatpush3.msra.mxu0 %v262_v43 }
  0x5a   :  { %500 = vmatprep.subr.mxu0 %v591_v0 }
  0x5b   :  { %501 = vmatpush3.msra.mxu0 %v261_v44 }
  0x5c   :  { %502 = vmatprep.subr.mxu0 %v591_v0 }
  0x5d   :  { %503 = vmatpush3.msra.mxu0 %v260_v45 }
  0x5e   :  { %504 = vmatprep.subr.mxu0 %v591_v0 }
  0x5f   :  { %505 = vmatpush3.msra.mxu0 %v259_v46 }
  0x60   :  { %506 = vmatprep.subr.mxu0 %v591_v0 }
  0x61   :  { %507 = vmatpush3.msra.mxu0 %v258_v52 }
  0x62   :  { %508 = vmatprep.subr.mxu0 %v591_v0 }
  0x63   :  { %509 = vmatpush3.msra.mxu0 %v257_v53 }
  0x64   :  { %510 = vmatprep.subr.mxu0 %v591_v0 }
  0x65   :  { %511 = vmatpush3.msra.mxu0 %v256_v54 }
 0x106   :  { %v157_v48 = vpop.f32.mrf.mxu0 }
 0x107   :  { %v158_v49 = vadd.f32 %v356_v47, %v157_v48 }
 0x108   :  { %v444_v50 = vpop.f32.mrf.mxu0 }
 0x109   :  { %v161_v51 = vmax.f32 %v158_v49, 0.0 }
 0x10b   :  { %478 = vmatmul.mubr.f32.vlgmr.msra.gmra.mxu1 %v161_v51 }
 0x1cb   :  { %v251_v56 = vpop.f32.mrf.mxu1 }
 0x1cc   :  { %v252_v57 = vadd.f32 %v357_v55, %v251_v56 }
 0x1cd   :  { %v479_v58 = vpop.f32.mrf.mxu1 }
 0x1ce   :  { %v255_v59 = vmax.f32 %v252_v57, 0.0 }
 0x1d0   :  { %513 = vmatmul.mubr.f32.vlgmr.msra.gmra.mxu0 %v255_v59 }
 0x290   :  { %v345_v61 = vpop.f32.mrf.mxu0 }
 0x291   :  { %v346_v62 = vadd.f32 %v358_v60, %v345_v61 }
 0x292   :  { %v514_v63 = vpop.f32.mrf.mxu0 }
 0x293   :  { %349 = vst [vmem:[%s718_s7] sm:$0xff] %v346_v62 }
 0x294   :  { %354 = vsyncpa [#allocation3], 1 }
 0x295   :  { %355 = vsyncpa [#allocation5], 1 }

</bundles_post_ra>
